<compile_context>
chip_gen: v7x
topology: tpu7x:2x2x1
jax: 0.10.0
libtpu: 0.0.40
codegen_flags: <defaults>
</compile_context>

<pallas_src>
import jax
import jax.numpy as jnp
from jax.experimental import pallas as pl
from jax.experimental.pallas import tpu as pltpu


def _swish_kernel(x_ref, o_ref):
    x = x_ref[...]
    xf = x.astype(jnp.float32)
    # exp -> EUP slot (free for a mem-bound kernel); one recip, one mul.
    sig = 1.0 / (1.0 + jnp.exp(-xf))
    o_ref[...] = (xf * sig).astype(o_ref.dtype)


def _round_up(a, b):
    return pl.cdiv(a, b) * b


def swish(x, *, target_tile_bytes=4 * 1024 * 1024):
    """Elementwise x * sigmoid(x) via a Pallas TPU kernel (any shape, float dtypes)."""
    orig_shape = x.shape
    dtype = x.dtype
    n = x.size
    if n == 0:
        return x
    itemsize = jnp.dtype(dtype).itemsize
    # sublane packing granularity (f32: 8, bf16: 16, int8/fp8: 32)
    row_mult = max(8, 32 // itemsize)

    # 1) Lane-dense slab: widest multiple-of-128 last dim that divides n.
    lane_w = 128
    for cand in (2048, 1024, 512, 256, 128):
        if n % cand == 0:
            lane_w = cand
            break

    ragged = (n % 128) != 0
    if ragged:
        # Only genuinely ragged inputs pay the pad + final-slice HBM passes.
        # swish(0) == 0, so padded values are harmless and discarded.
        lane_w = 128
        rows = pl.cdiv(n, lane_w)
        n_padded = rows * lane_w
        x2d = jnp.pad(jnp.ravel(x), (0, n_padded - n)).reshape(rows, lane_w)
    else:
        rows = n // lane_w
        x2d = x.reshape(rows, lane_w)   # free metadata reshape

    # 2) Block rows: ~4 MiB per block.  No exact-divisor requirement: the
    #    partial trailing block (if any) is masked by Pallas.
    target_rows = max(row_mult, target_tile_bytes // (lane_w * itemsize))
    if rows <= target_rows:
        if rows >= 2 * row_mult:
            # Guarantee >=2 (up to 8) grid steps: both v7x TensorCores pull
            # HBM, and v5e/v6e get DMA-in / compute / DMA-out overlap.
            n_steps = min(8, rows // row_mult)
            block_rows = _round_up(pl.cdiv(rows, n_steps), row_mult)
        else:
            block_rows = rows           # tiny input: single full-dim block
    else:
        block_rows = max(row_mult, (target_rows // row_mult) * row_mult)

    grid = (pl.cdiv(rows, block_rows),)
    block_bytes = block_rows * lane_w * itemsize
    # Double-buffered in+out comfortably fits; cap at 48 MiB for v7x (64 MiB
    # physical VMEM/TC), floor at 32 MiB so v5e's 16 MiB scoped default never
    # shrinks pipelining.
    vmem_limit = int(min(48 * 1024 * 1024, max(32 * 1024 * 1024, 6 * block_bytes)))

    out2d = pl.pallas_call(
        _swish_kernel,
        out_shape=jax.ShapeDtypeStruct((rows, lane_w), dtype),
        grid_spec=pltpu.PrefetchScalarGridSpec(
            num_scalar_prefetch=0,
            grid=grid,
            in_specs=[pl.BlockSpec((block_rows, lane_w), lambda i: (i, 0))],
            out_specs=pl.BlockSpec((block_rows, lane_w), lambda i: (i, 0)),
        ),
        compiler_params=pltpu.CompilerParams(
            dimension_semantics=("parallel",),
            vmem_limit_bytes=vmem_limit,
        ),
        cost_estimate=pl.CostEstimate(
            flops=4 * n,
            transcendentals=n,
            bytes_accessed=2 * n * itemsize,
        ),
    )(x2d)

    if ragged:
        return out2d.reshape(-1)[:n].reshape(orig_shape)
    return out2d.reshape(orig_shape)


if __name__ == "__main__":
    key = jax.random.PRNGKey(0)
    x = jax.random.normal(key, (2, 4, 16, 16), dtype=jnp.float32)

    y = swish(x)
    jax.block_until_ready(y)

    # reference check
    y_ref = x * jax.nn.sigmoid(x)
    assert y.shape == x.shape and y.dtype == x.dtype
    assert jnp.allclose(y, y_ref, atol=1e-6, rtol=1e-5)

    print("KERNEL_OK")
</pallas_src>

<mosaic_0001>
module attributes {stable_mosaic.version = 11 : i64} {
  func.func @_swish_kernel(%arg0: i32, %arg1: memref<1x2048xf32, #tpu.memory_space<vmem>>, %arg2: memref<1x2048xf32, #tpu.memory_space<vmem>>) attributes {dimension_semantics = [#tpu.dimension_semantics<parallel>], iteration_bounds = array<i64: 1>, scalar_prefetch = 0 : i64, scratch_operands = 0 : i64, tpu.core_type = #tpu.core_type<tc>, window_params = [{transform_indices = @transform_0, window_bounds = array<i64: 1, 2048>}, {transform_indices = @transform_1, window_bounds = array<i64: 1, 2048>}]} {
    %c0 = arith.constant 0 : index
    %c0_0 = arith.constant 0 : index
    %0 = vector.load %arg1[%c0, %c0_0] : memref<1x2048xf32, #tpu.memory_space<vmem>>, vector<1x2048xf32>
    %cst = arith.constant 0.000000e+00 : f32
    %1 = vector.broadcast %cst : f32 to vector<1x2048xf32>
    %2 = arith.subf %1, %0 : vector<1x2048xf32>
    %3 = math.exp %2 : vector<1x2048xf32>
    %cst_1 = arith.constant 1.000000e+00 : f32
    %4 = vector.broadcast %cst_1 : f32 to vector<1x2048xf32>
    %5 = arith.addf %4, %3 : vector<1x2048xf32>
    %cst_2 = arith.constant 1.000000e+00 : f32
    %6 = vector.broadcast %cst_2 : f32 to vector<1x2048xf32>
    %7 = arith.divf %6, %5 : vector<1x2048xf32>
    %8 = arith.mulf %0, %7 : vector<1x2048xf32>
    %c0_3 = arith.constant 0 : index
    %c0_4 = arith.constant 0 : index
    %9 = vector.load %arg2[%c0_3, %c0_4] : memref<1x2048xf32, #tpu.memory_space<vmem>>, vector<1x2048xf32>
    tpu.vector_store %arg2[%c0_3, %c0_4], %8 {strides = array<i32>} : memref<1x2048xf32, #tpu.memory_space<vmem>>, vector<1x2048xf32>,
    return
  }
  func.func @transform_0(%arg0: i32) -> (i32, i32) {
    %c0_i32 = arith.constant 0 : i32
    %c0_i32_0 = arith.constant 0 : i32
    return %arg0, %c0_i32 : i32, i32
  }
  func.func @transform_1(%arg0: i32) -> (i32, i32) {
    %c0_i32 = arith.constant 0 : i32
    %c0_i32_0 = arith.constant 0 : i32
    return %arg0, %c0_i32 : i32, i32
  }
}

</mosaic_0001>

<bundles_post_ra>
// kernel: tpu_custom_call.1
= control target key start
LH: loop header
LB: loop body
LE: loop exit
PB: predicated region body
PF: predicated region fallthrough
CT: control target
= control target key end

     0   :  { %6 = vsyncpa [#allocation3], 0  ;;  %s148_s0 = inlined_call_operand.hbm [shape: f32[1,2048], index: 0, kind: input, shape index: {}]   ;;  %s149_s1 = inlined_call_operand.hbm [shape: f32[1,2048], index: 1, kind: output, shape index: {}]  }
   0x1   :  { %7 = vsyncpa [#allocation4], 0  ;;  %s112_s6 = smov [#allocation2]   ;;  %s64_s10 = scalar_lea.hbm %s148_s0, 256 }
   0x2   :  { %s14_s7 = sshll.u32 %s112_s6, 4  ;;  %p65_p0 = scmp.ne.s32.totalorder %s148_s0, %s64_s10  ;;  %s15_s7 = int_to_ptr.vmem [resolvable:$true] %s14_s7 }
   0x3   :  { %p68_p1 = scmp.lt.u32.totalorder %s64_s10, %s148_s0 }
   0x5   :  { %p70_p2 = pnand %p68_p1, %p65_p0 }
   0x7   :  { %73 = shalt.err (!%p70_p2)
}
   0x8   :  { %s74_s15 = scalar_lea.vmem %s15_s7, 256  ;;  %p79_p4 = scmp.lt.s32.totalorder %s15_s7, %s15_s7 }
   0x9   :  { %p75_p3 = scmp.ne.s32.totalorder %s15_s7, %s74_s15  ;;  %p80_p5 = scmp.lt.s32.totalorder %s74_s15, %s74_s15 }
   0xb   :  { %p81_p6 = por %p80_p5, %p79_p4 }
   0xd   :  { %p82_p7 = pnand %p81_p6, %p75_p3 }
   0xf   :  { %85 = shalt.err (!%p82_p7)
}
  0x10   :  { %17 = dma.hbm_to_vmem [thread:$0]  %s148_s0, 256, %s15_s7, [#allocation3]  }
  0x11   :  { %108 = dma.done.wait [#allocation3], 256  }
  0x12   :  { %109 = vsyncadd [#allocation3], 4294967040  ;;  %v21_v0 = vld [vmem:[#allocation2] sm:$0xff]  ;;  %v22_v1 = vld [vmem:[#allocation2 + $0x8] sm:$0xff]  ;;  %s113_s18 = smov [#allocation5]  }
  0x13   :  { %v23_v2 = vsub.f32 0.0, %v21_v0  ;;  %v24_v3 = vsub.f32 0.0, %v22_v1  ;;  %s45_s19 = sshll.u32 %s113_s18, 4  ;;  %s46_s19 = int_to_ptr.vmem [resolvable:$true] %s45_s19 }
  0x14   :  { %s86_s0 = scalar_lea.vmem %s46_s19, 256  ;;  %p91_p9 = scmp.lt.s32.totalorder %s46_s19, %s46_s19 }
  0x15   :  { %v25_v4 = vmul.f32 1.442695, %v23_v2  ;;  %v27_v5 = vmul.f32 1.442695, %v24_v3  ;;  %p87_p8 = scmp.ne.s32.totalorder %s46_s19, %s86_s0  ;;  %p92_p10 = scmp.lt.s32.totalorder %s86_s0, %s86_s0 }
  0x17   :  { %56 = vpow2.f32 %v25_v4  ;;  %p93_p11 = por %p92_p10, %p91_p9 }
  0x18   :  { %58 = vpow2.f32 %v27_v5 }
  0x19   :  { %p94_p12 = pnand %p93_p11, %p87_p8 }
  0x21   :  { %v57_v6 = vpop.eup %56 }
  0x22   :  { %v59_v7 = vpop.eup %58  ;;  %v29_v8 = vadd.f32 1.0, %v57_v6 }
  0x23   :  { %v30_v9 = vadd.f32 1.0, %v59_v7 }
  0x24   :  { %60 = vrcp.f32 %v29_v8 }
  0x25   :  { %62 = vrcp.f32 %v30_v9 }
  0x2e   :  { %v61_v10 = vpop.eup %60 }
  0x2f   :  { %v63_v11 = vpop.eup %62  ;;  %v35_v12 = vmul.f32 %v61_v10, %v21_v0 }
  0x30   :  { %v36_v13 = vmul.f32 %v63_v11, %v22_v1 }
  0x31   :  { %37 = vst [vmem:[#allocation5] sm:$0xff] %v35_v12 }
  0x32   :  { %38 = vst [vmem:[#allocation5 + $0x8] sm:$0xff] %v36_v13 }
  0x33   :  { %97 = shalt.err (!%p94_p12)
}
  0x34   :  { %s98_s22 = scalar_lea.hbm %s149_s1, 256 }
  0x35   :  { %p99_p13 = scmp.ne.s32.totalorder %s149_s1, %s98_s22  ;;  %p102_p0 = scmp.lt.u32.totalorder %s98_s22, %s149_s1 }
  0x37   :  { %p104_p1 = pnand %p102_p0, %p99_p13 }
  0x39   :  { %107 = shalt.err (!%p104_p1)
}
  0x3a   :  { %48 = dma.vmem_to_hbm [thread:$0]  %s46_s19, 256, %s149_s1, [#allocation4]  }
  0x3b   :  { %110 = dma.done.wait [#allocation4], 256  }
  0x3c   :  { %111 = vsyncadd [#allocation4], 4294967040 }
  0x3d   :  { %52 = vsyncpa [#allocation3], 1 }
  0x3e   :  { %53 = vsyncpa [#allocation4], 1 }

</bundles_post_ra>
